<compile_context>
chip_gen: v7x
topology: tpu7x:2x2x1
jax: 0.10.0
libtpu: 0.0.40
codegen_flags: <defaults>
</compile_context>

<pallas_src>
import functools

import jax
import jax.numpy as jnp
from jax import lax
from jax.experimental import pallas as pl
from jax.experimental.pallas import tpu as pltpu


# ------------------------- Linear (tiled matmul) kernel -------------------------

def _linear_kernel(*refs, has_bias, scale):
    if has_bias:
        x_ref, w_ref, b_ref, o_ref = refs
    else:
        x_ref, w_ref, o_ref = refs
    # MXU operands stay in the input dtype; accumulate in f32.
    acc = jnp.dot(x_ref[...], w_ref[...], preferred_element_type=jnp.float32)
    if scale is not None:
        acc = acc * scale                      # folded softmax scale (free VALU)
    if has_bias:
        acc = acc + b_ref[...].astype(jnp.float32)
    o_ref[...] = acc.astype(o_ref.dtype)


def pallas_linear(x2d, w, b=None, *, scale=None, tile_m=512, tile_n=1024):
    """x2d: (M, Cin) @ w: (Cin, Cout) [+ b] [* scale] -> (M, Cout)."""
    M, Cin = x2d.shape
    Cout = w.shape[1]

    # Full-extent blocks when small; otherwise 8/128-aligned tiles with a cdiv
    # grid.  Pallas masks ragged boundary blocks; rows/cols are independent so
    # garbage boundary inputs only touch masked-out outputs (no host pad/slice).
    bm = M if M <= tile_m else tile_m
    bn = Cout if Cout <= tile_n else tile_n
    grid = (pl.cdiv(M, bm), pl.cdiv(Cout, bn))

    in_specs = [
        pl.BlockSpec((bm, Cin), lambda i, j: (i, 0)),
        pl.BlockSpec((Cin, bn), lambda i, j: (0, j)),
    ]
    args = [x2d, w]
    if b is not None:
        in_specs.append(pl.BlockSpec((1, bn), lambda i, j: (0, j)))
        args.append(b.reshape(1, Cout))

    kernel = functools.partial(_linear_kernel, has_bias=b is not None, scale=scale)
    return pl.pallas_call(
        kernel,
        out_shape=jax.ShapeDtypeStruct((M, Cout), x2d.dtype),
        grid_spec=pltpu.PrefetchScalarGridSpec(
            num_scalar_prefetch=0,
            grid=grid,
            in_specs=in_specs,
            out_specs=pl.BlockSpec((bm, bn), lambda i, j: (i, j)),
        ),
        compiler_params=pltpu.CompilerParams(
            dimension_semantics=("parallel", "parallel")),
    )(*args)


# ------------------------- Flash-style cross-attention kernel -------------------------

def _cross_attn_kernel(q_ref, kv_ref, o_ref, m_scr, l_scr, acc_scr, *,
                       num_heads, head_dim, kv_len, block_kv, mask_kv):
    # q_ref: (1, bq, C) already scaled by head_dim**-0.5 in the q projection.
    # kv_ref: (1, bkv, 2C) laid out as [k heads | v heads].
    # Scratch: m_scr/l_scr (bq, H) f32 running max/sum, acc_scr (bq, C) f32.
    ki = pl.program_id(2)

    @pl.when(ki == 0)
    def _init():
        m_scr[...] = jnp.full(m_scr.shape, -jnp.inf, dtype=m_scr.dtype)
        l_scr[...] = jnp.zeros(l_scr.shape, dtype=l_scr.dtype)
        acc_scr[...] = jnp.zeros(acc_scr.shape, dtype=acc_scr.dtype)

    C = num_heads * head_dim
    q = q_ref[0]                       # (bq, C)   input dtype -> MXU operand
    kv = kv_ref[0]                     # (bkv, 2C) input dtype -> MXU operand

    if mask_kv:
        row = ki * block_kv + lax.broadcasted_iota(jnp.int32, (block_kv, 1), 0)
        valid = row < kv_len                                    # (bkv, 1)
        kv = jnp.where(valid, kv, jnp.zeros_like(kv))           # kill OOB garbage
        col_valid = valid.reshape(1, block_kv)

    for h in range(num_heads):         # static unroll; streams into acc_scr
        lo = h * head_dim
        hi = lo + head_dim
        qh = q[:, lo:hi]               # (bq, D)
        kh = kv[:, lo:hi]              # (bkv, D)
        vh = kv[:, C + lo:C + hi]      # (bkv, D)

        # QK^T: contract over head_dim, input-dtype operands, f32 accumulation.
        s = lax.dot_general(qh, kh, (((1,), (1,)), ((), ())),
                            preferred_element_type=jnp.float32)   # (bq, bkv)
        if mask_kv:
            s = jnp.where(col_valid, s, -jnp.inf)

        # Online softmax (stats in f32).
        m_prev = m_scr[:, h:h + 1]
        m_new = jnp.maximum(m_prev, jnp.max(s, axis=-1, keepdims=True))
        alpha = jnp.exp(m_prev - m_new)
        p = jnp.exp(s - m_new)
        l_scr[:, h:h + 1] = alpha * l_scr[:, h:h + 1] + jnp.sum(
            p, axis=-1, keepdims=True)
        # PV: cast probabilities to v's dtype right before the MXU.
        pv = jnp.dot(p.astype(vh.dtype), vh,
                     preferred_element_type=jnp.float32)          # (bq, D)
        acc_scr[:, lo:hi] = alpha * acc_scr[:, lo:hi] + pv
        m_scr[:, h:h + 1] = m_new

    @pl.when(ki == pl.num_programs(2) - 1)
    def _finalize():
        inv_l = pl.reciprocal(l_scr[...], approx=True)            # EUP slot
        for h in range(num_heads):
            lo = h * head_dim
            hi = lo + head_dim
            acc_scr[:, lo:hi] = acc_scr[:, lo:hi] * inv_l[:, h:h + 1]
        o_ref[0] = acc_scr[...].astype(o_ref.dtype)               # lane-dense store


def pallas_cross_attention(q3, kv3, *, num_heads, block_q=256, block_kv=512):
    """q3: (B, Vq, C) (pre-scaled); kv3: (B, N, 2C) -> (B, Vq, C)."""
    B, Vq, C = q3.shape
    N = kv3.shape[1]
    assert C % num_heads == 0, "dim should be divisible by num_heads"
    D = C // num_heads

    bq = Vq if Vq <= block_q else block_q       # full extent or multiple of 8
    bkv = N if N <= block_kv else block_kv
    mask_kv = (N % bkv) != 0

    kernel = functools.partial(
        _cross_attn_kernel, num_heads=num_heads, head_dim=D,
        kv_len=N, block_kv=bkv, mask_kv=mask_kv)

    return pl.pallas_call(
        kernel,
        out_shape=jax.ShapeDtypeStruct((B, Vq, C), q3.dtype),
        grid_spec=pltpu.PrefetchScalarGridSpec(
            num_scalar_prefetch=0,
            grid=(B, pl.cdiv(Vq, bq), pl.cdiv(N, bkv)),
            in_specs=[
                pl.BlockSpec((1, bq, C), lambda b, qi, ki: (b, qi, 0)),
                pl.BlockSpec((1, bkv, 2 * C), lambda b, qi, ki: (b, ki, 0)),
            ],
            out_specs=pl.BlockSpec((1, bq, C), lambda b, qi, ki: (b, qi, 0)),
            scratch_shapes=[
                pltpu.VMEM((bq, num_heads), jnp.float32),   # running max m
                pltpu.VMEM((bq, num_heads), jnp.float32),   # running sum l
                pltpu.VMEM((bq, C), jnp.float32),           # output accumulator
            ],
        ),
        compiler_params=pltpu.CompilerParams(
            dimension_semantics=("parallel", "parallel", "arbitrary")),
    )(q3, kv3)


# ------------------------- Full forward (no inter-kernel permutes) -------------------------

def cross_attention_forward(x, query, w_q, w_kv, w_proj, b_proj, num_heads, *,
                            lin_tile_m=512, lin_tile_n=1024,
                            attn_block_q=256, attn_block_kv=512):
    B, N, C = x.shape
    Vq = query.shape[1]
    assert C % num_heads == 0, "dim should be divisible by num_heads"
    D = C // num_heads
    scale = float(D) ** -0.5

    # Softmax scale folded into the q projection epilogue.
    q = pallas_linear(query.reshape(B * Vq, C), w_q, scale=scale,
                      tile_m=lin_tile_m, tile_n=lin_tile_n)           # (B*Vq, C)
    kv = pallas_linear(x.reshape(B * N, C), w_kv,
                       tile_m=lin_tile_m, tile_n=lin_tile_n)          # (B*N, 2C)

    attn = pallas_cross_attention(q.reshape(B, Vq, C),
                                  kv.reshape(B, N, 2 * C),
                                  num_heads=num_heads,
                                  block_q=attn_block_q,
                                  block_kv=attn_block_kv)             # (B, Vq, C)

    out = pallas_linear(attn.reshape(B * Vq, C), w_proj, b_proj,
                        tile_m=lin_tile_m, tile_n=lin_tile_n)         # (B*Vq, C)
    return out.reshape(B, Vq, C)


# ------------------------- Pure-JAX reference (mirrors the PyTorch forward) -------------------------

def reference_forward(x, query, w_q, w_kv, w_proj, b_proj, num_heads):
    B, N, C = x.shape
    Vq = query.shape[1]
    H = num_heads
    D = C // H
    q = (query.reshape(-1, C) @ w_q).reshape(B, Vq, H, D)
    q = jnp.transpose(q, (0, 2, 1, 3))                      # (B, H, Vq, D)
    kv = (x.reshape(-1, C) @ w_kv).reshape(B, N, 2, H, D)
    kv = jnp.transpose(kv, (2, 0, 3, 1, 4))                 # (2, B, H, N, D)
    k, v = kv[0], kv[1]
    s = jnp.einsum('bhqd,bhkd->bhqk', q, k) * (float(D) ** -0.5)
    p = jax.nn.softmax(s, axis=-1)
    o = jnp.einsum('bhqk,bhkd->bhqd', p, v)
    o = jnp.transpose(o, (0, 2, 1, 3)).reshape(-1, C)
    o = o @ w_proj + b_proj[None, :]
    return o.reshape(B, Vq, C)


if __name__ == "__main__":
    def run_case(B, N, Vq, C, H, key, **kw):
        kx, kq, k1, k2, k3, k4 = jax.random.split(key, 6)
        x = jax.random.normal(kx, (B, N, C), dtype=jnp.float32)
        query = jax.random.normal(kq, (B, Vq, C), dtype=jnp.float32)
        # PyTorch shapes: q Linear (C,C) no bias; kv Linear (2C,C) no bias;
        # proj (C,C)+bias. Stored here already transposed to (Cin, Cout).
        w_q = jax.random.normal(k1, (C, C), dtype=jnp.float32) * (C ** -0.5)
        w_kv = jax.random.normal(k2, (C, 2 * C), dtype=jnp.float32) * (C ** -0.5)
        w_proj = jax.random.normal(k3, (C, C), dtype=jnp.float32) * (C ** -0.5)
        b_proj = jax.random.normal(k4, (C,), dtype=jnp.float32) * 0.01

        out = cross_attention_forward(x, query, w_q, w_kv, w_proj, b_proj, H, **kw)
        out = jax.block_until_ready(out)
        ref = reference_forward(x, query, w_q, w_kv, w_proj, b_proj, H)
        assert out.shape == (B, Vq, C)
        # slightly loose tolerance: softmax denom uses the EUP approx reciprocal
        err = jnp.max(jnp.abs(out - ref))
        assert jnp.allclose(out, ref, atol=2e-3, rtol=2e-3), f"max abs err {err}"

    key = jax.random.PRNGKey(0)
    key1, key2 = jax.random.split(key)

    # Case 1: demo shapes, single-block path (default tiling).
    run_case(2, 16, 8, 64, 8, key1)

    # Case 2: exercises the flash / online-softmax multi-block path with
    # ragged KV blocks (40 % 16 != 0), ragged q blocks (24 % 16 != 0) and a
    # ragged row tile in the linears (48 % 32 != 0, 80 % 32 != 0).
    run_case(2, 40, 24, 64, 8, key2,
             attn_block_q=16, attn_block_kv=16, lin_tile_m=32)

    print("KERNEL_OK")
</pallas_src>

<mosaic_0001>
module attributes {stable_mosaic.version = 11 : i64} {
  func.func @_linear_kernel(%arg0: i32, %arg1: i32, %arg2: memref<16x64xf32, #tpu.memory_space<vmem>>, %arg3: memref<64x64xf32, #tpu.memory_space<vmem>>, %arg4: memref<16x64xf32, #tpu.memory_space<vmem>>) attributes {dimension_semantics = [#tpu.dimension_semantics<parallel>, #tpu.dimension_semantics<parallel>], iteration_bounds = array<i64: 1, 1>, scalar_prefetch = 0 : i64, scratch_operands = 0 : i64, tpu.core_type = #tpu.core_type<tc>, window_params = [{transform_indices = @transform_0, window_bounds = array<i64: 16, 64>}, {transform_indices = @transform_1, window_bounds = array<i64: 64, 64>}, {transform_indices = @transform_2, window_bounds = array<i64: 16, 64>}]} {
    %c0 = arith.constant 0 : index
    %c0_0 = arith.constant 0 : index
    %0 = vector.load %arg2[%c0, %c0_0] : memref<16x64xf32, #tpu.memory_space<vmem>>, vector<16x64xf32>
    %c0_1 = arith.constant 0 : index
    %c0_2 = arith.constant 0 : index
    %1 = vector.load %arg3[%c0_1, %c0_2] : memref<64x64xf32, #tpu.memory_space<vmem>>, vector<64x64xf32>
    %cst = arith.constant dense<0.000000e+00> : vector<16x64xf32>
    %2 = tpu.matmul %0, %1, %cst {dimension_numbers = #tpu.dot_dimension_numbers<[1], [0], [0], [1], [0, 0, 1, 1], [], []>} : vector<16x64xf32>, vector<64x64xf32>, vector<16x64xf32> -> vector<16x64xf32>
    %cst_3 = arith.constant 0.353553385 : f32
    %3 = vector.broadcast %cst_3 : f32 to vector<16x64xf32>
    %4 = arith.mulf %2, %3 : vector<16x64xf32>
    %c0_4 = arith.constant 0 : index
    %c0_5 = arith.constant 0 : index
    %5 = vector.load %arg4[%c0_4, %c0_5] : memref<16x64xf32, #tpu.memory_space<vmem>>, vector<16x64xf32>
    tpu.vector_store %arg4[%c0_4, %c0_5], %4 {strides = array<i32>} : memref<16x64xf32, #tpu.memory_space<vmem>>, vector<16x64xf32>,
    return
  }
  func.func @transform_0(%arg0: i32, %arg1: i32) -> (i32, i32) {
    %c0_i32 = arith.constant 0 : i32
    %c0_i32_0 = arith.constant 0 : i32
    return %arg0, %c0_i32 : i32, i32
  }
  func.func @transform_1(%arg0: i32, %arg1: i32) -> (i32, i32) {
    %c0_i32 = arith.constant 0 : i32
    %c0_i32_0 = arith.constant 0 : i32
    return %c0_i32, %arg1 : i32, i32
  }
  func.func @transform_2(%arg0: i32, %arg1: i32) -> (i32, i32) {
    %c0_i32 = arith.constant 0 : i32
    return %arg0, %arg1 : i32, i32
  }
}

</mosaic_0001>

<bundles_post_ra>
// kernel: tpu_custom_call.1
= control target key start
LH: loop header
LB: loop body
LE: loop exit
PB: predicated region body
PF: predicated region fallthrough
CT: control target
= control target key end

     0   :  { %7 = vsyncpa [#allocation3], 0  ;;  %s347_s0 = inlined_call_operand.hbm [shape: f32[16,64], index: 0, kind: input, shape index: {}]   ;;  %s348_s1 = inlined_call_operand.hbm [shape: f32[64,64], index: 1, kind: input, shape index: {}]   ;;  %s349_s2 = inlined_call_operand.hbm [shape: f32[16,64], index: 2, kind: output, shape index: {}]  }
   0x1   :  { %8 = vsyncpa [#allocation6], 0 }
   0x2   :  { %9 = vsyncpa [#allocation4], 0  ;;  %s278_s9 = smov [#allocation2]   ;;  %s206_s13 = scalar_lea.hbm %s347_s0, 256 }
   0x3   :  { %s15_s10 = sshll.u32 %s278_s9, 4  ;;  %p207_p0 = scmp.ne.s32.totalorder %s347_s0, %s206_s13  ;;  %s16_s10 = int_to_ptr.vmem [resolvable:$true] %s15_s10 }
   0x4   :  { %p210_p1 = scmp.lt.u32.totalorder %s206_s13, %s347_s0 }
   0x6   :  { %p212_p2 = pnand %p210_p1, %p207_p0 }
   0x8   :  { %215 = shalt.err (!%p212_p2)
}
   0x9   :  { %s216_s18 = scalar_lea.vmem %s16_s10, 256  ;;  %p221_p4 = scmp.lt.s32.totalorder %s16_s10, %s16_s10 }
   0xa   :  { %p217_p3 = scmp.ne.s32.totalorder %s16_s10, %s216_s18  ;;  %p222_p5 = scmp.lt.s32.totalorder %s216_s18, %s216_s18 }
   0xc   :  { %p223_p6 = por %p222_p5, %p221_p4 }
   0xe   :  { %p224_p7 = pnand %p223_p6, %p217_p3 }
  0x10   :  { %227 = shalt.err (!%p224_p7)
}
  0x11   :  { %s279_s19 = smov 128   ;;  %s280_s20 = smov 8  }
  0x12   :  { %21 = dma.hbm_to_vmem [thread:$0]  %s347_s0, 256, %s16_s10, [#allocation3], %s279_s19, %s279_s19, %s280_s20  }
  0x13   :  { %s281_s23 = smov [#allocation5]   ;;  %s228_s27 = scalar_lea.hbm %s348_s1, 1024 }
  0x14   :  { %s27_s24 = sshll.u32 %s281_s23, 4  ;;  %p229_p8 = scmp.ne.s32.totalorder %s348_s1, %s228_s27  ;;  %s28_s24 = int_to_ptr.vmem [resolvable:$true] %s27_s24 }
  0x15   :  { %p232_p9 = scmp.lt.u32.totalorder %s228_s27, %s348_s1 }
  0x17   :  { %p234_p10 = pnand %p232_p9, %p229_p8 }
  0x19   :  { %237 = shalt.err (!%p234_p10)
}
  0x1a   :  { %s238_s4 = scalar_lea.vmem %s28_s24, 1024  ;;  %p243_p12 = scmp.lt.s32.totalorder %s28_s24, %s28_s24 }
  0x1b   :  { %p239_p11 = scmp.ne.s32.totalorder %s28_s24, %s238_s4  ;;  %p244_p13 = scmp.lt.s32.totalorder %s238_s4, %s238_s4 }
  0x1d   :  { %p245_p0 = por %p244_p13, %p243_p12 }
  0x1f   :  { %p246_p1 = pnand %p245_p0, %p239_p11 }
  0x21   :  { %249 = shalt.err (!%p246_p1)
}
  0x22   :  { %33 = dma.hbm_to_vmem [thread:$0]  %s348_s1, 1024, %s28_s24, [#allocation6], %s279_s19, %s279_s19, %s280_s20  }
  0x23   :  { %272 = dma.done.wait [#allocation3], 256  }
  0x24   :  { %273 = vsyncadd [#allocation3], 4294967040 }
  0x25   :  { %274 = dma.done.wait [#allocation6], 1024  }
  0x26   :  { %275 = vsyncadd [#allocation6], 4294966272  ;;  %v42_v0 = vld [vmem:[#allocation5] sm:$0xff]  ;;  %v43_v1 = vld [vmem:[#allocation5 + $0x8] sm:$0xff]  ;;  %vm50_vm0 = vcmask 523264   ;;  %s282_s1 = smov [#allocation7]  }
  0x27   :  { %v44_v2 = vld [vmem:[#allocation5 + $0x10] sm:$0xff]  ;;  %v185_v3 = vpack.c.bf16 %v43_v1, %v42_v0  ;;  %v45_v4 = vld [vmem:[#allocation5 + $0x18] sm:$0xff]  ;;  %v46_v6 = vld [vmem:[#allocation5 + $0x20] sm:$0xff]  ;;  %s141_s6 = sshll.u32 %s282_s1, 4  ;;  %s142_s6 = int_to_ptr.vmem [resolvable:$true] %s141_s6 }
  0x28   :  { %v189_v5 = vpack.c.bf16 %v45_v4, %v44_v2  ;;  %v47_v7 = vld [vmem:[#allocation5 + $0x28] sm:$0xff]  ;;  %v40_v8 = vld [vmem:[#allocation2] sm:$0xff]  ;;  %v49_v11 = vld [vmem:[#allocation5 + $0x38] sm:$0xff]  ;;  %s250_s7 = scalar_lea.vmem %s142_s6, 256  ;;  %p255_p3 = scmp.lt.s32.totalorder %s142_s6, %s142_s6 }
  0x29   :  { %186 = vmatprep.subr.bf16.mxu0 %v185_v3  ;;  %182 = vmatprep.mubr.msk.f32.mxu0 %vm50_vm0, %v40_v8  ;;  %v193_v9 = vpack.c.bf16 %v47_v7, %v46_v6  ;;  %v48_v10 = vld [vmem:[#allocation5 + $0x30] sm:$0xff]  ;;  %v41_v13 = vld [vmem:[#allocation2 + $0x8] sm:$0xff]  ;;  %p251_p2 = scmp.ne.s32.totalorder %s142_s6, %s250_s7  ;;  %p256_p4 = scmp.lt.s32.totalorder %s250_s7, %s250_s7 }
  0x2a   :  { %188 = vmatpush3.bf16.msra.mxu0 %v185_v3  ;;  %v197_v12 = vpack.c.bf16 %v49_v11, %v48_v10 }
  0x2b   :  { %190 = vmatprep.subr.bf16.mxu0 %v189_v5  ;;  %p257_p5 = por %p256_p4, %p255_p3 }
  0x2d   :  { %p258_p6 = pnand %p257_p5, %p251_p2 }
  0x2e   :  { %192 = vmatpush3.bf16.msra.mxu0 %v189_v5 }
  0x2f   :  { %194 = vmatprep.subr.bf16.mxu0 %v193_v9 }
  0x32   :  { %196 = vmatpush3.bf16.msra.mxu0 %v193_v9 }
  0x33   :  { %198 = vmatprep.subr.bf16.mxu0 %v197_v12 }
  0x36   :  { %200 = vmatpush3.bf16.msra.mxu0 %v197_v12 }
  0x39   :  { %183 = vmatmul.mubr.msk.f32.vlgmr.msra.gmra.mrb[0].mxu0 %vm50_vm0, %v41_v13 }
 0x10c   :  { %v184_v14 = vpop.f32.mrb[0].mxu0 }
 0x10d   :  { %v133_v15 = vmul.f32 0.35355338, %v184_v14  ;;  %v123_v16 = vpop.f32.mrb[1].mxu0 }
 0x10e   :  { %v132_v17 = vmul.f32 0.35355338, %v123_v16 }
 0x10f   :  { %135 = vst.msk [vmem:[#allocation7 + $0x8] sm:$0xff] %vm50_vm0, %v133_v15 }
 0x110   :  { %134 = vst.msk [vmem:[#allocation7] sm:$0xff] %vm50_vm0, %v132_v17 }
 0x111   :  { %261 = shalt.err (!%p258_p6)
}
 0x112   :  { %s262_s10 = scalar_lea.hbm %s349_s2, 256 }
 0x113   :  { %p263_p7 = scmp.ne.s32.totalorder %s349_s2, %s262_s10  ;;  %p266_p8 = scmp.lt.u32.totalorder %s262_s10, %s349_s2 }
 0x115   :  { %p268_p9 = pnand %p266_p8, %p263_p7 }
 0x117   :  { %271 = shalt.err (!%p268_p9)
}
 0x118   :  { %147 = dma.vmem_to_hbm [thread:$0]  %s142_s6, 256, %s349_s2, [#allocation4], %s279_s19, %s279_s19, %s280_s20  }
 0x119   :  { %276 = dma.done.wait [#allocation4], 256  }
 0x11a   :  { %277 = vsyncadd [#allocation4], 4294967040 }
 0x11b   :  { %151 = vsyncpa [#allocation3], 1 }
 0x11c   :  { %152 = vsyncpa [#allocation6], 1 }
 0x11d   :  { %153 = vsyncpa [#allocation4], 1 }

</bundles_post_ra>
